<compile_context>
chip_gen: v6e
topology: v6e:2x2x1
jax: 0.10.0
libtpu: 0.0.40
codegen_flags: <defaults>
</compile_context>

<pallas_src>
import math

import jax
import jax.numpy as jnp
import numpy as np
from jax.experimental import pallas as pl
from jax.experimental.pallas import tpu as pltpu


def _sd_mul_kernel(noise_ref, x_ref, o_ref):
    # Pure bandwidth-bound broadcast multiply: (TB, 1) noise column * (TB, TL)
    # data tile, in the input dtype on the VPU.
    o_ref[...] = x_ref[...] * noise_ref[...]


def _round_up(v, m):
    return ((v + m - 1) // m) * m


def _pick_block_bytes():
    """Per-generation (block_bytes, vmem_limit_bytes).

    v5e: 2 MiB blocks already sit at the HBM-roofline knee at ~0.8 TB/s.
    v6e: 4 MiB (1.4 TB/s); 4x double-buffered in+out = 16 MiB <= 32 MiB limit.
    v7x: 6 MiB (3.2 TB/s would leave ~20-25% per-step overhead at 2 MiB);
         4x6 = 24 MiB <= 32 MiB scoped limit, well under 64 MiB/TC physical.
    """
    try:
        kind = jax.devices()[0].device_kind.lower()
    except Exception:
        kind = ""
    if "v5e" in kind or ("v5" in kind and "lite" in kind):
        return 2 << 20, 16 << 20
    if "v6" in kind:
        return 4 << 20, 32 << 20
    if "7x" in kind or "v7" in kind:
        return 6 << 20, 32 << 20
    return 4 << 20, 32 << 20  # v4 / v5p / unknown: safe everywhere


def stochastic_depth_pallas(x, p, mode, key, training=True):
    """Pallas TPU equivalent of torchvision's stochastic_depth.

    x: Tensor[N, ...] (e.g. NCHW). key: jax PRNG key for the Bernoulli draw.

    Note: inside a full model, `x * noise[:, None]` in plain jnp would let XLA
    fuse this op into the neighboring conv / residual add and remove a full
    read+write of the activation; the standalone kernel below is for when this
    op is materialized on its own.
    """
    if p < 0.0 or p > 1.0:
        raise ValueError(f"drop probability has to be between 0 and 1, but got {p}")
    if mode not in ("batch", "row"):
        raise ValueError(f"mode has to be either 'batch' or 'row', but got {mode}")
    if not training or p == 0.0:
        return x

    survival_rate = 1.0 - p
    scale = (1.0 / survival_rate) if survival_rate > 0.0 else 0.0

    # ---- batch mode: wrapper fast path (perf review) -----------------------
    # Dropped branch never reads x; kept branch is a fusible scalar multiply.
    if mode == "batch":
        keep = jax.random.bernoulli(key, survival_rate, shape=())
        return jax.lax.cond(
            keep,
            lambda v: v * jnp.asarray(scale, dtype=v.dtype),
            lambda v: jnp.zeros_like(v),
            x,
        )

    # ---- row mode: Pallas kernel -------------------------------------------
    orig_shape = x.shape
    n = int(orig_shape[0])
    l = int(np.prod(orig_shape[1:])) if len(orig_shape) > 1 else 1
    itemsize = int(jnp.dtype(x.dtype).itemsize)

    # Sublane granularity: sub-32-bit dtypes pack along sublanes
    # (f32 -> 8, bf16/f16 -> 16, int8/fp8 -> 32).
    gran = max(8, (8 * 4) // itemsize)

    # Per-row noise, drawn once, in x.dtype.
    keep = jax.random.bernoulli(key, survival_rate, shape=(n, 1))
    noise = keep.astype(x.dtype) * jnp.asarray(scale, dtype=x.dtype)

    # Small-N fold: make the sublane dimension a multiple of `gran` by folding
    # spatial elements into it (row-major reshape), so every vreg's sublanes
    # are fully used and stores stay unmasked.
    fold = 1
    if n < gran:
        f = gran // math.gcd(n, gran)   # smallest f with (n*f) % gran == 0
        if f > 1 and l % f == 0:
            fold = f
    n2 = n * fold
    l2 = l // fold
    x2 = x.reshape(n2, l2)              # layout plumbing only (row-major)
    noise2 = jnp.repeat(noise, fold, axis=0) if fold > 1 else noise

    # ---- tile selection: lane-dense, generation-sized, (8,128)-legal --------
    max_block_bytes, vmem_limit = _pick_block_bytes()
    l_pad = _round_up(l2, 128)

    if n2 < gran:
        tb = n2                          # block dim == full array dim -> legal
    else:
        rows_per_block = max(1, max_block_bytes // max(1, l_pad * itemsize))
        tb_cap = max(gran, (rows_per_block // gran) * gran)
        tb_cap = min(tb_cap, (n2 // gran) * gran)
        # Even out row blocks (also balances v7x's two TensorCores).
        n_row_blocks = pl.cdiv(n2, tb_cap)
        tb = min(tb_cap, _round_up(pl.cdiv(n2, n_row_blocks), gran))

    tl_cap = max(128, (max_block_bytes // max(1, tb * itemsize)) // 128 * 128)
    # Even out column blocks (no mostly-padded tail block); tl stays a
    # multiple of 128 -> unmasked vst on full blocks.
    n_col_blocks = pl.cdiv(l_pad, tl_cap)
    tl = min(tl_cap, _round_up(pl.cdiv(l_pad, n_col_blocks), 128))

    grid = (pl.cdiv(n2, tb), pl.cdiv(l2, tl))
    # Megacore note: whenever the tensor is larger than one block and the row
    # axis has a single block, the column axis necessarily has >= 2 blocks
    # (tl <= tl_cap), so there is always a splittable parallel axis.

    # Note: when n2 % tb != 0 the last row block reads padded/garbage noise
    # rows, but Pallas only writes back the in-bounds part of the output
    # block, so results are unaffected. Do not "fix" this.
    out2 = pl.pallas_call(
        _sd_mul_kernel,
        out_shape=jax.ShapeDtypeStruct((n2, l2), x.dtype),
        grid=grid,
        in_specs=[
            pl.BlockSpec((tb, 1), lambda i, j: (i, 0)),    # per-row noise column
            pl.BlockSpec((tb, tl), lambda i, j: (i, j)),   # data tile
        ],
        out_specs=pl.BlockSpec((tb, tl), lambda i, j: (i, j)),
        # Output reuses x2's HBM buffer (free under jit where the activation is
        # an intermediate; eagerly XLA may insert a defensive copy).
        input_output_aliases={1: 0},
        compiler_params=pltpu.CompilerParams(
            # No stateful ops in-kernel -> every block independent -> both axes
            # parallel (lets Mosaic shard across v7x's 2 TensorCores).
            dimension_semantics=("parallel", "parallel"),
            vmem_limit_bytes=vmem_limit,
        ),
        cost_estimate=pl.CostEstimate(
            flops=n2 * l2,
            transcendentals=0,
            bytes_accessed=2 * n2 * l2 * itemsize + n2 * itemsize,
        ),
    )(noise2, x2)

    return out2.reshape(orig_shape)


class StochasticDepth:
    """Mirror of the PyTorch module interface (redraws per call like PyTorch)."""

    def __init__(self, p: float, mode: str, seed: int = 0):
        self.p = p
        self.mode = mode
        self.training = True
        self._key = jax.random.PRNGKey(seed)

    def __call__(self, x):
        # Fresh subkey every forward pass (training parity with PyTorch, which
        # re-samples the Bernoulli mask on each call).
        self._key, sub = jax.random.split(self._key)
        return stochastic_depth_pallas(x, self.p, self.mode, sub, self.training)

    def __repr__(self):
        return f"StochasticDepth(p={self.p}, mode={self.mode})"


if __name__ == "__main__":
    key = jax.random.PRNGKey(0)
    k1, k2, k3 = jax.random.split(key, 3)
    x = jax.random.normal(k1, (2, 4, 16, 16), dtype=jnp.float32)

    p = 0.2
    sr = 1.0 - p

    # --- row mode, training: each row is either zeroed or scaled by 1/sr ---
    mod_row = StochasticDepth(p=p, mode="row", seed=123)
    y_row = jax.block_until_ready(mod_row(x))
    xn, yn = np.asarray(x), np.asarray(y_row)
    for i in range(x.shape[0]):
        dropped = np.allclose(yn[i], 0.0, atol=1e-6)
        kept = np.allclose(yn[i], xn[i] / sr, rtol=1e-5, atol=1e-6)
        assert dropped or kept, f"row {i}: output is neither zero nor x/survival_rate"

    # --- larger batch (non-fold path, tb a multiple of the sublane gran) ---
    x16 = jax.random.normal(k2, (16, 4, 16, 16), dtype=jnp.float32)
    y16 = jax.block_until_ready(StochasticDepth(p=p, mode="row", seed=11)(x16))
    x16n, y16n = np.asarray(x16), np.asarray(y16)
    for i in range(16):
        dropped = np.allclose(y16n[i], 0.0, atol=1e-6)
        kept = np.allclose(y16n[i], x16n[i] / sr, rtol=1e-5, atol=1e-6)
        assert dropped or kept, f"batch-16 row {i}: bad output"

    # --- bf16: dtype-aware sublane granularity + small-N fold path ---
    xb = jax.random.normal(k3, (2, 4, 16, 16), dtype=jnp.bfloat16)
    yb16 = jax.block_until_ready(StochasticDepth(p=p, mode="row", seed=3)(xb))
    xbn = np.asarray(xb, dtype=np.float32)
    ybn = np.asarray(yb16, dtype=np.float32)
    for i in range(2):
        dropped = np.allclose(ybn[i], 0.0, atol=1e-3)
        kept = np.allclose(ybn[i], xbn[i] / sr, rtol=2e-2, atol=1e-2)
        assert dropped or kept, f"bf16 row {i}: bad output"

    # --- batch mode, training: all rows share one decision (fast path) ---
    mod_batch = StochasticDepth(p=p, mode="batch", seed=7)
    y_batch = jax.block_until_ready(mod_batch(x))
    yb = np.asarray(y_batch)
    all_dropped = np.allclose(yb, 0.0, atol=1e-6)
    all_kept = np.allclose(yb, xn / sr, rtol=1e-5, atol=1e-6)
    assert all_dropped or all_kept, "batch mode: decision not shared across batch"

    # --- eval mode: identity ---
    mod_eval = StochasticDepth(p=p, mode="row", seed=1)
    mod_eval.training = False
    y_eval = jax.block_until_ready(mod_eval(x))
    assert np.allclose(np.asarray(y_eval), xn), "eval mode must be identity"

    # --- non-128-multiple flattened size (EfficientNet 7x7 stage shape) ---
    x_odd = jax.random.normal(k1, (2, 3, 7, 7), dtype=jnp.float32)
    y_odd = jax.block_until_ready(StochasticDepth(p=p, mode="row", seed=5)(x_odd))
    xo, yo = np.asarray(x_odd), np.asarray(y_odd)
    for i in range(2):
        dropped = np.allclose(yo[i], 0.0, atol=1e-6)
        kept = np.allclose(yo[i], xo[i] / sr, rtol=1e-5, atol=1e-6)
        assert dropped or kept, f"odd-shape row {i}: bad output"

    print("KERNEL_OK")
</pallas_src>

<mosaic_0001>
module attributes {stable_mosaic.version = 11 : i64} {
  func.func @_sd_mul_kernel(%arg0: i32, %arg1: i32, %arg2: memref<8x1xf32, #tpu.memory_space<vmem>>, %arg3: memref<8x256xf32, #tpu.memory_space<vmem>>, %arg4: memref<8x256xf32, #tpu.memory_space<vmem>>) attributes {dimension_semantics = [#tpu.dimension_semantics<parallel>, #tpu.dimension_semantics<parallel>], iteration_bounds = array<i64: 1, 1>, scalar_prefetch = 0 : i64, scratch_operands = 0 : i64, tpu.core_type = #tpu.core_type<tc>, window_params = [{transform_indices = @transform_0, window_bounds = array<i64: 8, 1>}, {transform_indices = @transform_1, window_bounds = array<i64: 8, 256>}, {transform_indices = @transform_2, window_bounds = array<i64: 8, 256>}]} {
    %c0 = arith.constant 0 : index
    %c0_0 = arith.constant 0 : index
    %0 = vector.load %arg3[%c0, %c0_0] : memref<8x256xf32, #tpu.memory_space<vmem>>, vector<8x256xf32>
    %c0_1 = arith.constant 0 : index
    %c0_2 = arith.constant 0 : index
    %1 = vector.load %arg2[%c0_1, %c0_2] : memref<8x1xf32, #tpu.memory_space<vmem>>, vector<8x1xf32>
    %2 = vector.broadcast %1 : vector<8x1xf32> to vector<8x256xf32>
    %3 = arith.mulf %0, %2 : vector<8x256xf32>
    %c0_3 = arith.constant 0 : index
    %c0_4 = arith.constant 0 : index
    %4 = vector.load %arg4[%c0_3, %c0_4] : memref<8x256xf32, #tpu.memory_space<vmem>>, vector<8x256xf32>
    tpu.vector_store %arg4[%c0_3, %c0_4], %3 {strides = array<i32>} : memref<8x256xf32, #tpu.memory_space<vmem>>, vector<8x256xf32>,
    return
  }
  func.func @transform_0(%arg0: i32, %arg1: i32) -> (i32, i32) {
    %c0_i32 = arith.constant 0 : i32
    %c0_i32_0 = arith.constant 0 : i32
    return %arg0, %c0_i32 : i32, i32
  }
  func.func @transform_1(%arg0: i32, %arg1: i32) -> (i32, i32) {
    %c0_i32 = arith.constant 0 : i32
    return %arg0, %arg1 : i32, i32
  }
  func.func @transform_2(%arg0: i32, %arg1: i32) -> (i32, i32) {
    %c0_i32 = arith.constant 0 : i32
    return %arg0, %arg1 : i32, i32
  }
}

</mosaic_0001>

<bundles_post_ra>
// kernel: tpu_custom_call.1
= control target key start
LH: loop header
LB: loop body
LE: loop exit
PB: predicated region body
PF: predicated region fallthrough
CT: control target
= control target key end

     0   :  { %7 = vsyncpa [#allocation3], 0  ;;  %s126_s0 = inlined_call_operand.vmem [shape: f32[8,1], index: 0, kind: input, shape index: {}]   ;;  %s127_s1 = inlined_call_operand.hbm [shape: f32[8,256], index: 1, kind: input, shape index: {}, may-alias: {1,2}]   ;;  %s128_s2 = inlined_call_operand.hbm [shape: f32[8,256], index: 2, kind: output, shape index: {}, may-alias: {1,2}]  }
   0x1   :  { %8 = vsyncpa [#allocation4], 0  ;;  %s99_s9 = smov [#allocation2]  }
   0x2   :  { %s17_s10 = sshll.u32 %s99_s9, 4  ;;  %s18_s10 = int_to_ptr.vmem [resolvable:$true] %s17_s10 }
   0x3   :  { %s63_s11 = scalar_lea.vmem %s18_s10, 256  ;;  %p68_p1 = scmp.lt.s32.totalorder %s18_s10, %s18_s10 }
   0x4   :  { %p64_p0 = scmp.ne.s32.totalorder %s18_s10, %s63_s11  ;;  %p69_p2 = scmp.lt.s32.totalorder %s63_s11, %s63_s11 }
   0x6   :  { %p70_p3 = por %p69_p2, %p68_p1 }
   0x8   :  { %p71_p4 = pnand %p70_p3, %p64_p0 }
   0xa   :  { %74 = shalt.err (!%p71_p4)
}
   0xb   :  { %20 = dma.hbm_to_vmem [thread:$0]  %s127_s1, 256, %s18_s10, [#allocation3]  }
   0xc   :  { %95 = dma.done.wait [#allocation3], 256  }
   0xd   :  { %96 = vsyncadd [#allocation3], 4294967040  ;;  %v100_v0 = vmov 0   ;;  %v26_v1 = vld [vmem:[%s126_s0] sm:$0xff]  ;;  %v25_v3 = vld [vmem:[#allocation2 + $0x8] sm:$0xff]  ;;  %s101_s16 = smov [#allocation5]  }
   0xe   :  { %54 = vset.pattern.permute.xlu0 %v100_v0  ;;  %v24_v2 = vld [vmem:[#allocation2] sm:$0xff]  ;;  %s42_s17 = sshll.u32 %s101_s16, 4  ;;  %s43_s17 = int_to_ptr.vmem [resolvable:$true] %s42_s17 }
   0xf   :  { %29 = vperm.xlu0 %54, %v26_v1   ;;  %s75_s1 = scalar_lea.vmem %s43_s17, 256  ;;  %p80_p6 = scmp.lt.s32.totalorder %s43_s17, %s43_s17 }
  0x10   :  { %p76_p5 = scmp.ne.s32.totalorder %s43_s17, %s75_s1  ;;  %p81_p7 = scmp.lt.s32.totalorder %s75_s1, %s75_s1 }
  0x12   :  { %p82_p8 = por %p81_p7, %p80_p6 }
  0x14   :  { %p83_p9 = pnand %p82_p8, %p76_p5 }
  0x8a   :  { %v30_v4 = vpop.permute.xlu0 %29 }
  0x8b   :  { %v32_v5 = vmul.f32 %v30_v4, %v24_v2  ;;  %v33_v6 = vmul.f32 %v30_v4, %v25_v3 }
  0x8d   :  { %34 = vst [vmem:[#allocation5] sm:$0xff] %v32_v5  ;;  %35 = vst [vmem:[#allocation5 + $0x8] sm:$0xff] %v33_v6 }
  0x8e   :  { %86 = shalt.err (!%p83_p9)
}
  0x8f   :  { %45 = dma.vmem_to_hbm [thread:$0]  %s43_s17, 256, %s128_s2, [#allocation4]  }
  0x90   :  { %97 = dma.done.wait [#allocation4], 256  }
  0x91   :  { %98 = vsyncadd [#allocation4], 4294967040 }
  0x92   :  { %49 = vsyncpa [#allocation3], 1 }
  0x93   :  { %50 = vsyncpa [#allocation4], 1 }

</bundles_post_ra>
